<compile_context>
chip_gen: v7x
topology: tpu7x:2x2x1
jax: 0.10.0
libtpu: 0.0.40
codegen_flags: <defaults>
</compile_context>

<pallas_src>
import functools

import jax
import jax.numpy as jnp
from jax import lax
from jax.experimental import pallas as pl
from jax.experimental.pallas import tpu as pltpu


# --------------------------------------------------------------------- kernel
def _focal_loss_kernel(p0_ref, p1_ref, t_ref, o_ref, acc_ref, *,
                       gamma_int, gamma_f, alpha, apply_alpha,
                       n_rows, bn, need_row_mask):
    # p0_ref / p1_ref: (bn, th) class-0 / class-1 probabilities (lane-dense)
    # t_ref          : (bn, th) integer class ids
    # o_ref          : (1, 1, 128) per-batch-tile partial sums
    # acc_ref        : (bn, th) f32 running elementwise accumulator
    i = pl.program_id(0)          # batch-tile axis ("parallel")
    j = pl.program_id(1)          # HW/lane-tile axis ("arbitrary" reduction)

    @pl.when(j == 0)
    def _init():
        acc_ref[...] = jnp.zeros_like(acc_ref)

    p0 = p0_ref[...].astype(jnp.float32)
    p1 = p1_ref[...].astype(jnp.float32)
    is_one = t_ref[...] > 0

    pt = jnp.where(is_one, p1, p0)            # class gather == 2-way select
    logpt = jnp.log(pt)
    if apply_alpha:
        at = jnp.where(is_one, jnp.float32(1.0 - alpha), jnp.float32(alpha))
        logpt = logpt * at

    if gamma_int is not None:
        focal = lax.integer_pow(1.0 - pt, gamma_int)   # VPU multiplies only
    else:
        focal = (1.0 - pt) ** gamma_f                  # non-integer gamma fallback

    loss = -focal * logpt

    if need_row_mask:
        # Mask the padded tail of the last batch tile; jnp.where (select)
        # discards any NaN/Inf produced by log() on the padding garbage.
        row = i * bn + lax.broadcasted_iota(jnp.int32, loss.shape, 0)
        loss = jnp.where(row < n_rows, loss, jnp.float32(0.0))

    acc_ref[...] += loss

    @pl.when(j == pl.num_programs(1) - 1)
    def _finalize():
        a = acc_ref[...]
        s = jnp.sum(a, axis=0, keepdims=True)          # (1, th)
        th = s.shape[1]
        r = s[:, 0:128]
        for k in range(1, th // 128):                  # aligned lane folds
            r = r + s[:, 128 * k:128 * (k + 1)]
        o_ref[...] = r.reshape(1, 1, 128)


# -------------------------------------------------------------------- wrapper
def focal_loss_forward(probs, target, *, gamma=2, alpha=0.25, apply_alpha=True,
                       row_tile=None, lane_tile=None):
    """Pallas port of FocalLoss.forward.

    probs : (N, 2, HW) float probabilities (f32 / bf16 / f16 accepted).
    target: (N, 1, HW) or (N, HW) integer class indices in {0, 1}.
    """
    # TODO(synk): the PyTorch reference only applies the alpha weighting inside a
    # `self.alpha.type() != input.data.type()` guard (a dtype-conversion quirk
    # with no JAX analogue); it is exposed here as the explicit `apply_alpha`
    # flag (default True = the intended focal-loss path).
    N, C, HW = probs.shape
    assert C == 2, "FocalLoss expects 2 classes on dim 1"

    if probs.dtype not in (jnp.float32, jnp.bfloat16, jnp.float16):
        probs = probs.astype(jnp.float32)
    tgt = target.reshape(N, HW)
    if (not jnp.issubdtype(tgt.dtype, jnp.integer)) or tgt.dtype.itemsize > 4:
        tgt = tgt.astype(jnp.int32)

    # Lane-pad only when HW is not a multiple of 128 (neutral values: prob=1.0
    # at class 0  =>  -(1-1)^g * log(1) * alpha == 0, so padding adds nothing).
    HWp = ((HW + 127) // 128) * 128
    if HWp != HW:
        padw = HWp - HW
        probs = jnp.pad(probs, ((0, 0), (0, 0), (0, padw)), constant_values=1.0)
        tgt = jnp.pad(tgt, ((0, 0), (0, padw)), constant_values=0)

    # Free row-major collapse of the class axis: (N, 2, HWp) -> (N, 2*HWp).
    flat = probs.reshape(N, 2 * HWp)

    # ---- lane (HW) tile: a multiple of 128 that divides HWp ----------------
    if lane_tile is not None:
        assert lane_tile % 128 == 0 and HWp % lane_tile == 0
        th = lane_tile
    else:
        th = 128
        for k in range(min(HWp, 512) // 128, 0, -1):
            if HWp % (128 * k) == 0:
                th = 128 * k
                break
    nj = HWp // th

    # ---- row (batch) tile from a ~512 KiB/buffer VMEM budget ---------------
    budget_elems = 128 * 1024
    pref_rows = max(8, min(1024, (budget_elems // th) // 8 * 8))
    if row_tile is not None:
        assert row_tile % 8 == 0, "row_tile must be a multiple of 8"
        bn = N if row_tile >= N else row_tile
    else:
        bn = N if N <= pref_rows else pref_rows
    nb = (N + bn - 1) // bn
    need_row_mask = (N % bn) != 0

    gamma_int = int(gamma) if float(gamma) == int(gamma) else None

    kernel = functools.partial(
        _focal_loss_kernel,
        gamma_int=gamma_int, gamma_f=float(gamma),
        alpha=float(alpha), apply_alpha=bool(apply_alpha),
        n_rows=N, bn=bn, need_row_mask=need_row_mask)

    # Rough per-kernel VMEM need (double-buffered inputs + accumulator).
    pbytes = probs.dtype.itemsize
    tbytes = tgt.dtype.itemsize
    vmem_need = bn * th * (4 * pbytes + 2 * tbytes + 4) + 2 * 128 * 4
    vmem_limit = max(16 * 1024 * 1024, int(vmem_need * 2))

    partials = pl.pallas_call(
        kernel,
        grid=(nb, nj),
        in_specs=[
            pl.BlockSpec((bn, th), lambda i, j: (i, j)),        # class-0 plane
            pl.BlockSpec((bn, th), lambda i, j: (i, j + nj)),   # class-1 plane
            pl.BlockSpec((bn, th), lambda i, j: (i, j)),        # target ids
        ],
        out_specs=pl.BlockSpec((1, 1, 128), lambda i, j: (i, 0, 0)),
        out_shape=jax.ShapeDtypeStruct((nb, 1, 128), jnp.float32),
        scratch_shapes=[pltpu.VMEM((bn, th), jnp.float32)],
        compiler_params=pltpu.CompilerParams(
            dimension_semantics=("parallel", "arbitrary"),
            vmem_limit_bytes=vmem_limit),
    )(flat, flat, tgt)

    return jnp.sum(partials) / HW


# ----------------------------------------------------------- pure-JAX reference
def focal_loss_reference(probs, target, gamma=2, alpha=0.25, apply_alpha=True):
    N, C, HW = probs.shape
    t = target.reshape(N, HW)
    p = probs.astype(jnp.float32)
    pt = jnp.where(t > 0, p[:, 1, :], p[:, 0, :])
    logpt = jnp.log(pt)
    if apply_alpha:
        logpt = logpt * jnp.where(t > 0, 1.0 - alpha, alpha)
    return jnp.sum(-((1.0 - pt) ** gamma) * logpt) / HW


# ------------------------------------------------------------------------ main
if __name__ == "__main__":
    key = jax.random.PRNGKey(0)
    k1, k2, k3, k4 = jax.random.split(key, 4)

    # Shapes implied by the module: input (len, 2, h*w), target (len, 1, h*w).
    N, C, H, W = 2, 2, 16, 16
    HW = H * W
    logits = jax.random.normal(k1, (N, C, HW), jnp.float32)
    probs = jax.nn.softmax(logits, axis=1)          # module consumes probabilities
    target = jax.random.bernoulli(k2, 0.5, (N, 1, HW)).astype(jnp.int32)

    loss = focal_loss_forward(probs, target, gamma=2, alpha=0.25)
    jax.block_until_ready(loss)
    ref = focal_loss_reference(probs, target, gamma=2, alpha=0.25)
    assert abs(float(loss) - float(ref)) <= 1e-4 * (abs(float(ref)) + 1.0), \
        (float(loss), float(ref))

    # Second check: ragged batch (N=20 with 8-row tiles) + lane-tiled HW,
    # exercising the in-kernel tail mask and the tiled reduction path.
    N2, HW2 = 20, 256
    logits2 = jax.random.normal(k3, (N2, C, HW2), jnp.float32)
    probs2 = jax.nn.softmax(logits2, axis=1)
    target2 = jax.random.bernoulli(k4, 0.5, (N2, 1, HW2)).astype(jnp.int32)
    loss2 = focal_loss_forward(probs2, target2, gamma=2, alpha=0.25,
                               row_tile=8, lane_tile=128)
    jax.block_until_ready(loss2)
    ref2 = focal_loss_reference(probs2, target2, gamma=2, alpha=0.25)
    assert abs(float(loss2) - float(ref2)) <= 2e-4 * (abs(float(ref2)) + 1.0), \
        (float(loss2), float(ref2))

    print("KERNEL_OK")
</pallas_src>

<mosaic_0001>
module attributes {stable_mosaic.version = 11 : i64} {
  func.func @_focal_loss_kernel(%arg0: i32, %arg1: i32, %arg2: memref<2x256xf32, #tpu.memory_space<vmem>>, %arg3: memref<2x256xf32, #tpu.memory_space<vmem>>, %arg4: memref<2x256xi32, #tpu.memory_space<vmem>>, %arg5: memref<1x1x128xf32, #tpu.memory_space<vmem>>, %arg6: memref<2x256xf32, #tpu.memory_space<vmem>>) attributes {dimension_semantics = [#tpu.dimension_semantics<parallel>, #tpu.dimension_semantics<arbitrary>], iteration_bounds = array<i64: 1, 1>, scalar_prefetch = 0 : i64, scratch_operands = 1 : i64, tpu.core_type = #tpu.core_type<tc>, window_params = [{transform_indices = @transform_0, window_bounds = array<i64: 2, 256>}, {transform_indices = @transform_1, window_bounds = array<i64: 2, 256>}, {transform_indices = @transform_2, window_bounds = array<i64: 2, 256>}, {transform_indices = @transform_3, window_bounds = array<i64: 1, 1, 128>}]} {
    %c0_i32 = arith.constant 0 : i32
    %0 = arith.cmpi eq, %arg1, %c0_i32 : i32
    %1 = arith.extui %0 : i1 to i32
    %c0_i32_0 = arith.constant 0 : i32
    %2 = arith.cmpi ne, %1, %c0_i32_0 : i32
    scf.if %2 {
      %cst_16 = arith.constant 0.000000e+00 : f32
      %26 = vector.broadcast %cst_16 : f32 to vector<2x256xf32>
      %c0_17 = arith.constant 0 : index
      %c0_18 = arith.constant 0 : index
      %27 = vector.load %arg6[%c0_17, %c0_18] : memref<2x256xf32, #tpu.memory_space<vmem>>, vector<2x256xf32>
      tpu.vector_store %arg6[%c0_17, %c0_18], %26 {strides = array<i32>} : memref<2x256xf32, #tpu.memory_space<vmem>>, vector<2x256xf32>,
    } else {
    }
    %c0 = arith.constant 0 : index
    %c0_1 = arith.constant 0 : index
    %3 = vector.load %arg2[%c0, %c0_1] : memref<2x256xf32, #tpu.memory_space<vmem>>, vector<2x256xf32>
    %c0_2 = arith.constant 0 : index
    %c0_3 = arith.constant 0 : index
    %4 = vector.load %arg3[%c0_2, %c0_3] : memref<2x256xf32, #tpu.memory_space<vmem>>, vector<2x256xf32>
    %c0_4 = arith.constant 0 : index
    %c0_5 = arith.constant 0 : index
    %5 = vector.load %arg4[%c0_4, %c0_5] : memref<2x256xi32, #tpu.memory_space<vmem>>, vector<2x256xi32>
    %c0_i32_6 = arith.constant 0 : i32
    %6 = vector.broadcast %c0_i32_6 : i32 to vector<2x256xi32>
    %7 = arith.cmpi sgt, %5, %6 : vector<2x256xi32>
    %8 = arith.select %7, %4, %3 : vector<2x256xi1>, vector<2x256xf32>
    %9 = math.log %8 : vector<2x256xf32>
    %cst = arith.constant 7.500000e-01 : f32
    %cst_7 = arith.constant 2.500000e-01 : f32
    %10 = vector.broadcast %cst : f32 to vector<2x256xf32>
    %11 = vector.broadcast %cst_7 : f32 to vector<2x256xf32>
    %12 = arith.select %7, %10, %11 : vector<2x256xi1>, vector<2x256xf32>
    %13 = arith.mulf %9, %12 : vector<2x256xf32>
    %cst_8 = arith.constant 1.000000e+00 : f32
    %14 = vector.broadcast %cst_8 : f32 to vector<2x256xf32>
    %15 = arith.subf %14, %8 : vector<2x256xf32>
    %16 = arith.mulf %15, %15 : vector<2x256xf32>
    %cst_9 = arith.constant 0.000000e+00 : f32
    %17 = vector.broadcast %cst_9 : f32 to vector<2x256xf32>
    %18 = arith.subf %17, %16 : vector<2x256xf32>
    %19 = arith.mulf %18, %13 : vector<2x256xf32>
    %c0_10 = arith.constant 0 : index
    %c0_11 = arith.constant 0 : index
    %20 = vector.load %arg6[%c0_10, %c0_11] : memref<2x256xf32, #tpu.memory_space<vmem>>, vector<2x256xf32>
    %21 = arith.addf %20, %19 : vector<2x256xf32>
    %c0_12 = arith.constant 0 : index
    %c0_13 = arith.constant 0 : index
    %22 = vector.load %arg6[%c0_12, %c0_13] : memref<2x256xf32, #tpu.memory_space<vmem>>, vector<2x256xf32>
    tpu.vector_store %arg6[%c0_12, %c0_13], %21 {strides = array<i32>} : memref<2x256xf32, #tpu.memory_space<vmem>>, vector<2x256xf32>,
    %c0_i32_14 = arith.constant 0 : i32
    %23 = arith.cmpi eq, %arg1, %c0_i32_14 : i32
    %24 = arith.extui %23 : i1 to i32
    %c0_i32_15 = arith.constant 0 : i32
    %25 = arith.cmpi ne, %24, %c0_i32_15 : i32
    scf.if %25 {
      %c0_16 = arith.constant 0 : index
      %c0_17 = arith.constant 0 : index
      %26 = vector.load %arg6[%c0_16, %c0_17] : memref<2x256xf32, #tpu.memory_space<vmem>>, vector<2x256xf32>
      %cst_18 = arith.constant dense<0.000000e+00> : vector<256xf32>
      %27 = vector.multi_reduction <add>, %26, %cst_18 [0] : vector<2x256xf32> to vector<256xf32>
      %28 = vector.shape_cast %27 : vector<256xf32> to vector<1x256xf32>
      %29 = vector.extract_strided_slice %28 {offsets = [0, 0], sizes = [1, 128], strides = [1, 1]} : vector<1x256xf32> to vector<1x128xf32>
      %30 = vector.extract_strided_slice %28 {offsets = [0, 128], sizes = [1, 128], strides = [1, 1]} : vector<1x256xf32> to vector<1x128xf32>
      %31 = arith.addf %29, %30 : vector<1x128xf32>
      %32 = vector.shape_cast %31 : vector<1x128xf32> to vector<1x1x128xf32>
      %c0_19 = arith.constant 0 : index
      %c0_20 = arith.constant 0 : index
      %c0_21 = arith.constant 0 : index
      %33 = vector.load %arg5[%c0_19, %c0_20, %c0_21] : memref<1x1x128xf32, #tpu.memory_space<vmem>>, vector<1x1x128xf32>
      tpu.vector_store %arg5[%c0_19, %c0_20, %c0_21], %32 {strides = array<i32>} : memref<1x1x128xf32, #tpu.memory_space<vmem>>, vector<1x1x128xf32>,
    } else {
    }
    return
  }
  func.func @transform_0(%arg0: i32, %arg1: i32) -> (i32, i32) {
    %c0_i32 = arith.constant 0 : i32
    return %arg0, %arg1 : i32, i32
  }
  func.func @transform_1(%arg0: i32, %arg1: i32) -> (i32, i32) {
    %c1_i32 = arith.constant 1 : i32
    %0 = arith.addi %arg1, %c1_i32 : i32
    %c0_i32 = arith.constant 0 : i32
    return %arg0, %0 : i32, i32
  }
  func.func @transform_2(%arg0: i32, %arg1: i32) -> (i32, i32) {
    %c0_i32 = arith.constant 0 : i32
    return %arg0, %arg1 : i32, i32
  }
  func.func @transform_3(%arg0: i32, %arg1: i32) -> (i32, i32, i32) {
    %c0_i32 = arith.constant 0 : i32
    %c0_i32_0 = arith.constant 0 : i32
    %c0_i32_1 = arith.constant 0 : i32
    return %arg0, %c0_i32, %c0_i32_0 : i32, i32, i32
  }
}

</mosaic_0001>

<bundles_post_ra>
// kernel: tpu_custom_call.1
= control target key start
LH: loop header
LB: loop body
LE: loop exit
PB: predicated region body
PF: predicated region fallthrough
CT: control target
= control target key end

     0   :  { %8 = vsyncpa [#allocation4], 0  ;;  %s268_s0 = inlined_call_operand.hbm [shape: f32[2,512], index: 0, kind: input, shape index: {}]   ;;  %s269_s1 = inlined_call_operand.hbm [shape: f32[2,512], index: 1, kind: input, shape index: {}]   ;;  %s270_s2 = inlined_call_operand.vmem [shape: s32[2,256], index: 2, kind: input, shape index: {}]   ;;  %s271_s3 = inlined_call_operand.hbm [shape: f32[1,1,128], index: 3, kind: output, shape index: {}]  }
   0x1   :  { %9 = vsyncpa [#allocation7], 0 }
   0x2   :  { %10 = vsyncpa [#allocation5], 0  ;;  %s226_s14 = scalar_lea.hbm %s269_s1, 64  ;;  %s198_s15 = smov [#allocation3]  }
   0x3   :  { %s17_s16 = sshll.u32 %s198_s15, 4  ;;  %s199_s17 = smov [#allocation6]   ;;  %s18_s16 = int_to_ptr.vmem [resolvable:$true] %s17_s16 }
   0x4   :  { %s31_s18 = sshll.u32 %s199_s17, 4  ;;  %s123_s21 = scalar_lea.hbm %s268_s0, 64  ;;  %s32_s18 = int_to_ptr.vmem [resolvable:$true] %s31_s18 }
   0x5   :  { %p124_p0 = scmp.ne.s32.totalorder %s268_s0, %s123_s21  ;;  %s125_s26 = scalar_lea.hbm %s268_s0, 128 }
   0x6   :  { %p126_p1 = scmp.lt.u32.totalorder %s125_s26, %s123_s21  ;;  %p127_p2 = scmp.lt.u32.totalorder %s123_s21, %s268_s0 }
   0x8   :  { %p128_p3 = por %p127_p2, %p126_p1 }
   0xa   :  { %p129_p4 = pnand %p128_p3, %p124_p0 }
   0xc   :  { %132 = shalt.err (!%p129_p4)
}
   0xd   :  { %s133_s29 = scalar_lea.vmem %s18_s16, 64  ;;  %p138_p6 = scmp.lt.s32.totalorder %s18_s16, %s18_s16 }
   0xe   :  { %p134_p5 = scmp.ne.s32.totalorder %s18_s16, %s133_s29  ;;  %p139_p7 = scmp.lt.s32.totalorder %s133_s29, %s133_s29 }
  0x10   :  { %p140_p8 = por %p139_p7, %p138_p6 }
  0x12   :  { %p141_p9 = pnand %p140_p8, %p134_p5 }
  0x14   :  { %144 = shalt.err (!%p141_p9)
}
  0x15   :  { %20 = dma.hbm_to_vmem [thread:$0]  %s268_s0, 64, %s18_s16, [#allocation4]  }
  0x16   :  { %s169_s7 = scalar_lea.hbm %s269_s1, 128  ;;  %p148_p11 = scmp.lt.u32.totalorder %s226_s14, %s269_s1 }
  0x17   :  { %p146_p10 = scmp.ne.s32.totalorder %s226_s14, %s169_s7  ;;  %p149_p12 = scmp.lt.u32.totalorder %s169_s7, %s169_s7 }
  0x18   :  { %p151_p0 = scmp.lt.u32.totalorder %s169_s7, %s226_s14 }
  0x19   :  { %p150_p13 = por %p149_p12, %p148_p11 }
  0x1b   :  { %p152_p1 = por %p151_p0, %p150_p13 }
  0x1d   :  { %p153_p2 = pnand %p152_p1, %p146_p10 }
  0x1f   :  { %156 = shalt.err (!%p153_p2)
}
  0x20   :  { %s157_s10 = scalar_lea.vmem %s32_s18, 64  ;;  %p162_p4 = scmp.lt.s32.totalorder %s32_s18, %s32_s18 }
  0x21   :  { %p158_p3 = scmp.ne.s32.totalorder %s32_s18, %s157_s10  ;;  %p163_p5 = scmp.lt.s32.totalorder %s157_s10, %s157_s10 }
  0x23   :  { %p164_p6 = por %p163_p5, %p162_p4 }
  0x25   :  { %p165_p7 = pnand %p164_p6, %p158_p3 }
  0x27   :  { %168 = shalt.err (!%p165_p7)
}
  0x28   :  { %34 = dma.hbm_to_vmem [thread:$0]  %s226_s14, 64, %s32_s18, [#allocation7]  }
  0x29   :  { %192 = dma.done.wait [#allocation4], 64  }
  0x2a   :  { %193 = vsyncadd [#allocation4], 4294967232 }
  0x2b   :  { %194 = dma.done.wait [#allocation7], 64  }
  0x2c   :  { %195 = vsyncadd [#allocation7], 4294967232  ;;  %v200_v0 = vmov 0.0   ;;  %v50_v1 = vld [vmem:[#allocation3] sm:$0xf]  ;;  %v201_v8 = vmov 0.25  }
  0x2d   :  { %49 = vst [vmem:[#allocation2] sm:$0xf] %v200_v0  ;;  %v51_v2 = vld [vmem:[#allocation6] sm:$0xf]  ;;  %v52_v3 = vld [vmem:[%s270_s2] sm:$0xf] }
  0x2e   :  { %vm53_vm0 = vcmp.gt.s32.totalorder %v52_v3, 0  ;;  %vm81_vm1 = vcmask 1041408   ;;  %s202_s2 = smov [#allocation8]  }
  0x2f   :  { %v54_v4 = vsel %vm53_vm0, %v51_v2, %v50_v1  ;;  %v57_v9 = vsel %vm53_vm0, 0.75, %v201_v8  ;;  %s104_s11 = sshll.u32 %s202_s2, 4  ;;  %s105_s11 = int_to_ptr.vmem [resolvable:$true] %s104_s11 }
  0x30   :  { %121 = vlog2.f32 %v54_v4  ;;  %v59_v5 = vsub.f32 1.0, %v54_v4  ;;  %s170_s12 = scalar_lea.vmem %s105_s11, 16  ;;  %s174_s13 = scalar_lea.vmem %s105_s11, 32 }
  0x31   :  { %p171_p8 = scmp.ne.s32.totalorder %s105_s11, %s170_s12  ;;  %p175_p9 = scmp.lt.s32.totalorder %s105_s11, %s105_s11 }
  0x32   :  { %v60_v6 = vmul.f32 %v59_v5, %v59_v5  ;;  %p176_p10 = scmp.lt.s32.totalorder %s174_s13, %s170_s12 }
  0x34   :  { %v61_v11 = vsub.f32 0.0, %v60_v6  ;;  %v63_v13 = vld [vmem:[#allocation2] sm:$0xf]  ;;  %p177_p11 = por %p176_p10, %p175_p9 }
  0x36   :  { %p178_p12 = pnand %p177_p11, %p171_p8 }
  0x3a   :  { %v122_v7 = vpop.eup %121 }
  0x3b   :  { %v56_v10 = vmul.f32 0.6931472, %v122_v7 }
  0x3d   :  { %v58_v12 = vmul.f32 %v57_v9, %v56_v10 }
  0x3f   :  { %v62_v14 = vmul.f32 %v61_v11, %v58_v12 }
  0x41   :  { %v64_v15 = vadd.f32 %v63_v13, %v62_v14 }
  0x43   :  { %65 = vst [vmem:[#allocation2] sm:$0xf] %v64_v15 }
  0x4a   :  { %v115_v16 = vld.sshfl [vmem:[#allocation2] sm:$0x33 pattern:$0x76325410] }
  0x4b   :  { %v78_v17 = vcombine.high %v115_v16, %v115_v16  ;;  %v82_v18 = vsel %vm81_vm1, %v115_v16, 0.0 }
  0x4c   :  { %v83_v19 = vrot.slane %v82_v18, 4 }
  0x4d   :  { %v89_v20 = vsel %vm81_vm1, %v78_v17, 0.0 }
  0x4e   :  { %v84_v21 = vadd.f32 %v83_v19, %v82_v18  ;;  %v90_v22 = vrot.slane %v89_v20, 4 }
  0x50   :  { %v85_v23 = vrot.slane %v84_v21, 2  ;;  %v91_v24 = vadd.f32 %v90_v22, %v89_v20 }
  0x52   :  { %v86_v25 = vadd.f32 %v85_v23, %v84_v21  ;;  %v92_v26 = vrot.slane %v91_v24, 2 }
  0x54   :  { %v87_v27 = vrot.slane %v86_v25, 1  ;;  %v93_v28 = vadd.f32 %v92_v26, %v91_v24 }
  0x56   :  { %v94_v29 = vrot.slane %v93_v28, 1  ;;  %v88_v30 = vadd.f32 %v87_v27, %v86_v25 }
  0x58   :  { %v95_v31 = vadd.f32 %v94_v29, %v93_v28 }
  0x5a   :  { %v96_v32 = vadd.f32 %v95_v31, %v88_v30 }
  0x5c   :  { %97 = vst [vmem:[#allocation8] sm:$0x1] %v96_v32 }
  0x5d   :  { %181 = shalt.err (!%p178_p12)
}
  0x5e   :  { %s182_s16 = scalar_lea.hbm %s271_s3, 16 }
  0x5f   :  { %p183_p13 = scmp.ne.s32.totalorder %s271_s3, %s182_s16  ;;  %p186_p0 = scmp.lt.u32.totalorder %s182_s16, %s271_s3 }
  0x61   :  { %p188_p1 = pnand %p186_p0, %p183_p13 }
  0x63   :  { %191 = shalt.err (!%p188_p1)
}
  0x64   :  { %107 = dma.vmem_to_hbm [thread:$0]  %s105_s11, 16, %s271_s3, [#allocation5]  }
  0x65   :  { %196 = dma.done.wait [#allocation5], 16  }
  0x66   :  { %197 = vsyncadd [#allocation5], 4294967280 }
  0x67   :  { %111 = vsyncpa [#allocation4], 1 }
  0x68   :  { %112 = vsyncpa [#allocation7], 1 }
  0x69   :  { %113 = vsyncpa [#allocation5], 1 }

</bundles_post_ra>
